<compile_context>
chip_gen: v7x
topology: tpu7x:2x2x1
jax: 0.10.0
libtpu: 0.0.40
codegen_flags: <defaults>
</compile_context>

<pallas_src>
import jax
import jax.numpy as jnp
from jax.experimental import pallas as pl
from jax.experimental.pallas import tpu as pltpu

D_DIM = 128   # dictionary size
W_DIM = 32    # embedding size
MAX_TILE_B = 512  # pairs per grid step (lane-dense multiple of 128)


def sgns_kernel(idx1_ref, idx2_ref,   # VMEM (1, TILE_B) int32, lane-major
                w1_ref, w2_ref,       # VMEM (W, D) f32, bias pre-folded, resident
                out_ref):             # VMEM (1, TILE_B) f32
    tile_b = out_ref.shape[-1]
    d_dim = w1_ref.shape[-1]

    idx1 = idx1_ref[...]                                           # (1, TILE_B)
    idx2 = idx2_ref[...]                                           # (1, TILE_B)

    # Transposed one-hot gather on the MXU: onehotT[d, b] = (d == idx[b]).
    iota = jax.lax.broadcasted_iota(jnp.int32, (d_dim, tile_b), 0)  # (D, TILE_B)
    oh1 = (iota == idx1).astype(jnp.float32)                        # (D, TILE_B)
    oh2 = (iota == idx2).astype(jnp.float32)                        # (D, TILE_B)

    # (W, D) @ (D, TILE_B) -> (W, TILE_B): lane-dense embedding lookups.
    p1 = jnp.dot(w1_ref[...], oh1, preferred_element_type=jnp.float32)
    p2 = jnp.dot(w2_ref[...], oh2, preferred_element_type=jnp.float32)

    # Per-pair dot product over W: cross-sublane reduce (XLU) -> lane-major (1, TILE_B).
    d = jnp.sum(p1 * p2, axis=0, keepdims=True)

    # Exact sigmoid epilogue (approx reciprocal was the source of the tolerance failure).
    out_ref[...] = 1.0 / (1.0 + jnp.exp(-d))


def _choose_tile(batch, max_tile=MAX_TILE_B):
    """Lane-dense tile size (multiple of 128); keep >= 2 grid steps when possible."""
    bp = ((batch + 127) // 128) * 128
    tile = min(max_tile, bp)
    if bp > 128 and tile >= bp:
        # Split into two tiles so v7x's two TensorCores both get work.
        tile = ((bp // 2 + 127) // 128) * 128
    return tile


def sgns_forward(idx1, idx2, w1, b1, w2, b2, *, max_tile_b=MAX_TILE_B):
    """Batched SGNS forward. Returns (B, 2) = [1 - sigmoid, sigmoid] per pair."""
    idx1 = jnp.asarray(idx1, jnp.int32).reshape(-1)
    idx2 = jnp.asarray(idx2, jnp.int32).reshape(-1)
    B = idx1.shape[0]
    W, D = w1.shape  # torch.nn.Linear convention: (out_features, in_features)

    # TODO(synk): torch raises on out-of-range indices; we clamp instead of raising.
    idx1 = jnp.clip(idx1, 0, D - 1)
    idx2 = jnp.clip(idx2, 0, D - 1)

    tile_b = _choose_tile(B, max_tile_b)
    num_tiles = -(-B // tile_b)
    Bp = num_tiles * tile_b
    if Bp != B:
        pad = Bp - B
        idx1 = jnp.concatenate([idx1, jnp.zeros((pad,), jnp.int32)])
        idx2 = jnp.concatenate([idx2, jnp.zeros((pad,), jnp.int32)])
    idx1 = idx1.reshape(1, Bp)
    idx2 = idx2.reshape(1, Bp)

    # Pre-fold biases: the one-hot selects exactly one column, so adding the bias to
    # every column of W in the wrapper is equivalent to adding it after the lookup.
    w1b = (w1 + b1[:, None]).astype(jnp.float32)   # (W, D)
    w2b = (w2 + b2[:, None]).astype(jnp.float32)   # (W, D)

    p = pl.pallas_call(
        sgns_kernel,
        out_shape=jax.ShapeDtypeStruct((1, Bp), jnp.float32),
        grid_spec=pltpu.PrefetchScalarGridSpec(
            num_scalar_prefetch=0,
            grid=(num_tiles,),
            in_specs=[
                pl.BlockSpec((1, tile_b), lambda t: (0, t)),   # idx1, lane-major
                pl.BlockSpec((1, tile_b), lambda t: (0, t)),   # idx2, lane-major
                pl.BlockSpec((W, D), lambda t: (0, 0)),        # W1 + b1, resident
                pl.BlockSpec((W, D), lambda t: (0, 0)),        # W2 + b2, resident
            ],
            out_specs=pl.BlockSpec((1, tile_b), lambda t: (0, t)),
        ),
        compiler_params=pltpu.CompilerParams(dimension_semantics=("parallel",)),
    )(idx1, idx2, w1b, w2b)

    p = p.reshape(Bp)[:B]
    # torch.cat([1 - sigmoid, sigmoid]) per pair, assembled in the XLA wrapper (trivial).
    return jnp.stack([1.0 - p, p], axis=-1)


if __name__ == "__main__":
    key = jax.random.PRNGKey(0)
    k1, k2, k3, k4, k5, k6 = jax.random.split(key, 6)

    B = 512
    bound = 1.0 / (D_DIM ** 0.5)
    w1 = jax.random.uniform(k1, (W_DIM, D_DIM), jnp.float32, -bound, bound)
    b1 = jax.random.uniform(k2, (W_DIM,), jnp.float32, -bound, bound)
    w2 = jax.random.uniform(k3, (W_DIM, D_DIM), jnp.float32, -bound, bound)
    b2 = jax.random.uniform(k4, (W_DIM,), jnp.float32, -bound, bound)
    idx1 = jax.random.randint(k5, (B,), 0, D_DIM, dtype=jnp.int32)
    idx2 = jax.random.randint(k6, (B,), 0, D_DIM, dtype=jnp.int32)

    out = jax.block_until_ready(sgns_forward(idx1, idx2, w1, b1, w2, b2))

    # Pure-JAX reference (same math as the torch forward, per pair).
    proj1 = w1.T[idx1] + b1
    proj2 = w2.T[idx2] + b2
    s = jax.nn.sigmoid(jnp.sum(proj1 * proj2, axis=-1))
    ref = jnp.stack([1.0 - s, s], axis=-1)
    assert out.shape == (B, 2)
    assert jnp.allclose(out, ref, atol=1e-4, rtol=1e-4), (out[:4], ref[:4])

    # Single-pair call (original module's forward signature) still works.
    single = jax.block_until_ready(
        sgns_forward(jnp.array([7]), jnp.array([42]), w1, b1, w2, b2))
    s1 = jax.nn.sigmoid(jnp.dot(w1[:, 7] + b1, w2[:, 42] + b2))
    ref1 = jnp.stack([1.0 - s1, s1]).reshape(1, 2)
    assert single.shape == (1, 2)
    assert jnp.allclose(single, ref1, atol=1e-4, rtol=1e-4), (single, ref1)

    print("KERNEL_OK")
</pallas_src>

<mosaic_0001>
module attributes {stable_mosaic.version = 11 : i64} {
  func.func @sgns_kernel(%arg0: i32, %arg1: memref<1x256xi32, #tpu.memory_space<vmem>>, %arg2: memref<1x256xi32, #tpu.memory_space<vmem>>, %arg3: memref<32x128xf32, #tpu.memory_space<vmem>>, %arg4: memref<32x128xf32, #tpu.memory_space<vmem>>, %arg5: memref<1x256xf32, #tpu.memory_space<vmem>>) attributes {dimension_semantics = [#tpu.dimension_semantics<parallel>], iteration_bounds = array<i64: 2>, scalar_prefetch = 0 : i64, scratch_operands = 0 : i64, tpu.core_type = #tpu.core_type<tc>, window_params = [{transform_indices = @transform_0, window_bounds = array<i64: 1, 256>}, {transform_indices = @transform_1, window_bounds = array<i64: 1, 256>}, {pipeline_mode = #tpu.pipeline_mode<synchronous>, transform_indices = @transform_2, window_bounds = array<i64: 32, 128>}, {pipeline_mode = #tpu.pipeline_mode<synchronous>, transform_indices = @transform_3, window_bounds = array<i64: 32, 128>}, {transform_indices = @transform_4, window_bounds = array<i64: 1, 256>}]} {
    %c0 = arith.constant 0 : index
    %c0_0 = arith.constant 0 : index
    %0 = vector.load %arg1[%c0, %c0_0] : memref<1x256xi32, #tpu.memory_space<vmem>>, vector<1x256xi32>
    %c0_1 = arith.constant 0 : index
    %c0_2 = arith.constant 0 : index
    %1 = vector.load %arg2[%c0_1, %c0_2] : memref<1x256xi32, #tpu.memory_space<vmem>>, vector<1x256xi32>
    %2 = tpu.iota {dimensions = array<i32: 0>} : vector<128x256xi32>
    %3 = vector.broadcast %0 : vector<1x256xi32> to vector<128x256xi32>
    %4 = arith.cmpi eq, %2, %3 : vector<128x256xi32>
    %5 = arith.extui %4 : vector<128x256xi1> to vector<128x256xi32>
    %6 = arith.sitofp %5 : vector<128x256xi32> to vector<128x256xf32>
    %7 = vector.broadcast %1 : vector<1x256xi32> to vector<128x256xi32>
    %8 = arith.cmpi eq, %2, %7 : vector<128x256xi32>
    %9 = arith.extui %8 : vector<128x256xi1> to vector<128x256xi32>
    %10 = arith.sitofp %9 : vector<128x256xi32> to vector<128x256xf32>
    %c0_3 = arith.constant 0 : index
    %c0_4 = arith.constant 0 : index
    %11 = vector.load %arg3[%c0_3, %c0_4] : memref<32x128xf32, #tpu.memory_space<vmem>>, vector<32x128xf32>
    %cst = arith.constant dense<0.000000e+00> : vector<32x256xf32>
    %12 = tpu.matmul %11, %6, %cst {dimension_numbers = #tpu.dot_dimension_numbers<[1], [0], [0], [1], [0, 0, 1, 1], [], []>} : vector<32x128xf32>, vector<128x256xf32>, vector<32x256xf32> -> vector<32x256xf32>
    %c0_5 = arith.constant 0 : index
    %c0_6 = arith.constant 0 : index
    %13 = vector.load %arg4[%c0_5, %c0_6] : memref<32x128xf32, #tpu.memory_space<vmem>>, vector<32x128xf32>
    %cst_7 = arith.constant dense<0.000000e+00> : vector<32x256xf32>
    %14 = tpu.matmul %13, %10, %cst_7 {dimension_numbers = #tpu.dot_dimension_numbers<[1], [0], [0], [1], [0, 0, 1, 1], [], []>} : vector<32x128xf32>, vector<128x256xf32>, vector<32x256xf32> -> vector<32x256xf32>
    %15 = arith.mulf %12, %14 : vector<32x256xf32>
    %cst_8 = arith.constant dense<0.000000e+00> : vector<256xf32>
    %16 = vector.multi_reduction <add>, %15, %cst_8 [0] : vector<32x256xf32> to vector<256xf32>
    %17 = vector.shape_cast %16 : vector<256xf32> to vector<1x256xf32>
    %cst_9 = arith.constant 0.000000e+00 : f32
    %18 = vector.broadcast %cst_9 : f32 to vector<1x256xf32>
    %19 = arith.subf %18, %17 : vector<1x256xf32>
    %20 = math.exp %19 : vector<1x256xf32>
    %cst_10 = arith.constant 1.000000e+00 : f32
    %21 = vector.broadcast %cst_10 : f32 to vector<1x256xf32>
    %22 = arith.addf %21, %20 : vector<1x256xf32>
    %cst_11 = arith.constant 1.000000e+00 : f32
    %23 = vector.broadcast %cst_11 : f32 to vector<1x256xf32>
    %24 = arith.divf %23, %22 : vector<1x256xf32>
    %c0_12 = arith.constant 0 : index
    %c0_13 = arith.constant 0 : index
    %25 = vector.load %arg5[%c0_12, %c0_13] : memref<1x256xf32, #tpu.memory_space<vmem>>, vector<1x256xf32>
    tpu.vector_store %arg5[%c0_12, %c0_13], %24 {strides = array<i32>} : memref<1x256xf32, #tpu.memory_space<vmem>>, vector<1x256xf32>,
    return
  }
  func.func @transform_0(%arg0: i32) -> (i32, i32) {
    %c0_i32 = arith.constant 0 : i32
    %c0_i32_0 = arith.constant 0 : i32
    return %c0_i32, %arg0 : i32, i32
  }
  func.func @transform_1(%arg0: i32) -> (i32, i32) {
    %c0_i32 = arith.constant 0 : i32
    %c0_i32_0 = arith.constant 0 : i32
    return %c0_i32, %arg0 : i32, i32
  }
  func.func @transform_2(%arg0: i32) -> (i32, i32) {
    %c0_i32 = arith.constant 0 : i32
    %c0_i32_0 = arith.constant 0 : i32
    %c0_i32_1 = arith.constant 0 : i32
    return %c0_i32, %c0_i32_0 : i32, i32
  }
  func.func @transform_3(%arg0: i32) -> (i32, i32) {
    %c0_i32 = arith.constant 0 : i32
    %c0_i32_0 = arith.constant 0 : i32
    %c0_i32_1 = arith.constant 0 : i32
    return %c0_i32, %c0_i32_0 : i32, i32
  }
  func.func @transform_4(%arg0: i32) -> (i32, i32) {
    %c0_i32 = arith.constant 0 : i32
    %c0_i32_0 = arith.constant 0 : i32
    return %c0_i32, %arg0 : i32, i32
  }
}

</mosaic_0001>

<bundles_post_ra>
// kernel: tpu_custom_call.1
= control target key start
LH: loop header
LB: loop body
LE: loop exit
PB: predicated region body
PF: predicated region fallthrough
CT: control target
= control target key end

     0   :  { %s1830_s0 = inlined_call_operand.hbm [shape: s32[1,512], index: 0, kind: input, shape index: {}]   ;;  %s1831_s1 = inlined_call_operand.hbm [shape: s32[1,512], index: 1, kind: input, shape index: {}]   ;;  %s1832_s2 = inlined_call_operand.hbm [shape: f32[32,128], index: 2, kind: input, shape index: {}]   ;;  %s1833_s3 = inlined_call_operand.hbm [shape: f32[32,128], index: 3, kind: input, shape index: {}]   ;;  %s1834_s4 = inlined_call_operand.hbm [shape: f32[1,512], index: 4, kind: output, shape index: {}]  }
   0x1   :  { %1839 = sst [smem:[#allocation16_spill]] %s1832_s2 }
   0x2   :  { %9 = vsyncpa [#allocation3], 0 }
   0x3   :  { %11 = vsyncpa [#allocation3 + $0x1], 0 }
   0x4   :  { %12 = vsyncpa [#allocation6], 0 }
   0x5   :  { %14 = vsyncpa [#allocation6 + $0x1], 0 }
   0x6   :  { %15 = vsyncpa [#allocation9], 0 }
   0x7   :  { %16 = vsyncpa [#allocation4], 0 }
   0x8   :  { %18 = vsyncpa [#allocation4 + $0x1], 0  ;;  %s1418_s15 = smov 0   ;;  %s1420_s16 = smov 0  }
   0x9   :  { %s1422_s17 = smov 0   ;;  %s1424_s18 = smov 0  }
   0xa LB: > { %s1439_s19 = sadd.s32 4294967295, %s1381_s18   ;;  %s885_s20 = sadd.s32 4294967294, %s1381_s18   ;;  %s1381_s18 = sphi %s1424_s18, %s1860_s18   ;;  %s1377_s17 = sphi %s1422_s17, %s1859_s17   ;;  %s1373_s16 = sphi %s1420_s16, %s1858_s16   ;;  %s1369_s15 = sphi %s1418_s15, %s1857_s15  }
   0xb   : > { %p44_p0 = scmp.ne.s32.totalorder %s1373_s16, %s1369_s15  ;;  %p1835_p1 = scmp.eq.s32.totalorder %s1439_s19, 0 }
   0xc   : > { %p142_p3 = scmp.eq.s32.totalorder %s885_s20, 1  ;;  %p886_p5 = scmp.ge.s32.totalorder %s1381_s18, 1 }
   0xd   : > { %p1448_p4 = por %p1835_p1, %p44_p0  ;;  %p149_p7 = scmp.lt.s32.totalorder %s1381_s18, 3 }
   0xe   : > { %p1453_p6 = por %p142_p3, %p44_p0  ;;  %s1383_s24 = smov [#allocation7]  }
   0xf   : > { %s1840_s21 = scalar_select %p1448_p4, 1, 0 }
  0x10   : > { %s1841_s22 = scalar_select %p1453_p6, 1, 0 }
  0x11   : > { %p1458_p8 = pnand %p886_p5, %p149_p7  ;;  %s161_s25 = sshll.u32 %s1383_s24, 4  ;;  %s1462_s25 = int_to_ptr.vmem [resolvable:$true] %s161_s25 }
  0x12   : > { %s1384_s27 = smov [#allocation8]   ;;  %s1844_s2 = sld [smem:[#allocation16_spill]] }
  0x13   : > { %s1842_s23 = scalar_select %p1458_p8, 1, 0 }
  0x14   : > { %p1116_p9 = pneg %p1458_p8  ;;  %s174_s28 = sshll.u32 %s1384_s27, 4  ;;  %s1473_s28 = int_to_ptr.vmem [resolvable:$true] %s174_s28 }
  0x16   : > { %p1469_p11 = pnand %p1116_p9, %p1835_p1 }
  0x18   : > { %s1187_s5 = scalar_lea.hbm %s1844_s2, 512  ;;  %p1189_p13 = pneg %p1469_p11 }
  0x19   : > { %p1188_p12 = scmp.ne.s32.totalorder %s1844_s2, %s1187_s5  ;;  %p1194_p5 = scmp.lt.u32.totalorder %s1187_s5, %s1844_s2 }
  0x1b   : > { %p1190_p0 = pnand %p1189_p13, %p1188_p12 }
  0x1d   : > { %p1191_p3 = pneg %p1190_p0 }
  0x1f   : > { %p1196_p7 = pnand %p1194_p5, %p1191_p3 }
  0x21   : > { %1199 = shalt.err (!%p1196_p7)
}
  0x22   : > { %s1200_s10 = scalar_lea.vmem %s1462_s25, 512  ;;  %p1208_p2 = scmp.lt.s32.totalorder %s1462_s25, %s1462_s25 }
  0x23   : > { %p1201_p9 = scmp.ne.s32.totalorder %s1462_s25, %s1200_s10  ;;  %p1209_p12 = scmp.lt.s32.totalorder %s1200_s10, %s1200_s10 }
  0x25   : > { %p1203_p10 = pnand %p1201_p9, %p1189_p13  ;;  %p1210_p0 = por %p1209_p12, %p1208_p2 }
  0x27   : > { %p1204_p1 = pneg %p1203_p10 }
  0x29   : > { %p1211_p6 = pnand %p1210_p0, %p1204_p1 }
  0x2b   : > { %1214 = shalt.err (!%p1211_p6)
}
  0x2c   : > { %s1385_s11 = smov 128   ;;  %s1386_s12 = smov 8  }
  0x2d   : > { %1119 = dma.hbm_to_vmem [thread:$0]  (!%p1469_p11), %s1844_s2, 512, %s1462_s25, [#allocation6], %s1385_s11, %s1385_s11, %s1386_s12  }
  0x2e   : > { %s1215_s27 = scalar_lea.hbm %s1833_s3, 512 }
  0x2f   : > { %p1216_p2 = scmp.ne.s32.totalorder %s1833_s3, %s1215_s27  ;;  %p1222_p10 = scmp.lt.u32.totalorder %s1215_s27, %s1833_s3 }
  0x31   : > { %p1218_p1 = pnand %p1216_p2, %p1189_p13 }
  0x33   : > { %p1219_p6 = pneg %p1218_p1 }
  0x35   : > { %p1224_p3 = pnand %p1222_p10, %p1219_p6 }
  0x37   : > { %1227 = shalt.err (!%p1224_p3)
}
  0x38   : > { %s1228_s25 = scalar_lea.vmem %s1473_s28, 512  ;;  %p1236_p12 = scmp.lt.s32.totalorder %s1473_s28, %s1473_s28 }
  0x39   : > { %p1229_p5 = scmp.ne.s32.totalorder %s1473_s28, %s1228_s25  ;;  %p1237_p0 = scmp.lt.s32.totalorder %s1228_s25, %s1228_s25 }
  0x3b   : > { %p1231_p7 = pnand %p1229_p5, %p1189_p13  ;;  %p1238_p2 = por %p1237_p0, %p1236_p12 }
  0x3d   : > { %p1232_p9 = pneg %p1231_p7 }
  0x3f   : > { %p1239_p1 = pnand %p1238_p2, %p1232_p9 }
  0x41   : > { %1242 = shalt.err (!%p1239_p1)
}
  0x42   : > { %1122 = dma.hbm_to_vmem [thread:$0]  (!%p1469_p11), %s1833_s3, 512, %s1473_s28, [#allocation9], %s1385_s11, %s1385_s11, %s1386_s12  }
  0x43   : > { %s1528_s9 = sadd.s32 1, %s1381_s18   ;;  %s31_s26 = sadd.s32 1, %s1377_s17 }
  0x44   : > { %s28_s10 = ssub.s32 %s1381_s18, %s1528_s9  ;;  %p38_p13 = scmp.ne.s32.totalorder %s1377_s17, %s1373_s16 }
  0x45   : > { %p29_p6 = scmp.eq.s32.totalorder %s28_s10, 0  ;;  %p39_p10 = scmp.eq.s32.totalorder %s1381_s18, 0 }
  0x46   : > { %p1845_p3 = scmp.eq.s32.totalorder %s1439_s19, 1  ;;  %p1136_p7 = scmp.lt.s32.totalorder %s1381_s18, 2 }
  0x47   : > { %s1544_s14 = scalar_select %p29_p6, %s1377_s17, %s31_s26  }
  0x48   : > { %p1538_p5 = por %p1845_p3, %p38_p13  ;;  %p40_p9 = por %p39_p10, %p38_p13 }
  0x49   : > { %s188_s20 = sand.u32 1, %s1377_s17   ;;  %s1035_s11 = sshll.u32 %s1381_s18, 5 }
  0x4a   : > { %s1846_s13 = scalar_select %p1538_p5, 1, 0 }
  0x4b   : > { %s1547_s28 = sshll.u32 %s188_s20, 1  ;;  %s1553_s27 = scalar_lea.hbm %s1830_s0, %s1035_s11 }
  0x4c   : > { %s192_s29 = scalar_lea.vmem [#allocation2], %s1547_s28  ;;  %p1558_p11 = pnand %p1136_p7, %p40_p9 }
  0x4d   : > { %s200_s30 = sshll.u32 %s192_s29, 4  ;;  %s1565_s7 = scalar_lea.hbm %s1831_s1, %s1035_s11  ;;  %s1556_s30 = int_to_ptr.vmem [resolvable:$true] %s200_s30 }
  0x4e   : > { %s207_s8 = sand.u32 1, %s1381_s18   ;;  %s189_s26 = scalar_lea.sflag [#allocation3], %s188_s20 }
  0x4f   : > { %s1243_s10 = scalar_lea.hbm %s1553_s27, 32  ;;  %p1245_p0 = pneg %p1558_p11 }
  0x50   : > { %p1244_p12 = scmp.ne.s32.totalorder %s1553_s27, %s1243_s10  ;;  %s1248_s29 = scalar_lea.hbm %s1830_s0, 64 }
  0x51   : > { %p1249_p13 = scmp.lt.u32.totalorder %s1553_s27, %s1830_s0  ;;  %p1250_p6 = scmp.lt.u32.totalorder %s1248_s29, %s1243_s10 }
  0x52   : > { %p1246_p2 = pnand %p1245_p0, %p1244_p12  ;;  %p1252_p3 = scmp.lt.u32.totalorder %s1243_s10, %s1553_s27 }
  0x53   : > { %p1251_p10 = por %p1250_p6, %p1249_p13 }
  0x54   : > { %p1247_p1 = pneg %p1246_p2 }
  0x55   : > { %p1253_p7 = por %p1252_p3, %p1251_p10 }
  0x57   : > { %p1254_p9 = pnand %p1253_p7, %p1247_p1 }
  0x59   : > { %1257 = shalt.err (!%p1254_p9)
}
  0x5a   : > { %s1258_s20 = scalar_lea.vmem %s1556_s30, 32  ;;  %s1387_s11 = smov [#allocation2]  }
  0x5b   : > { %p1259_p12 = scmp.ne.s32.totalorder %s1556_s30, %s1258_s20  ;;  %s1263_s25 = sshll.u32 %s1387_s11, 4  ;;  %s1264_s25 = int_to_ptr.vmem [resolvable:$false] %s1263_s25 }
  0x5c   : > { %s1265_s2 = scalar_lea.vmem %s1264_s25, 64  ;;  %p1266_p4 = scmp.lt.s32.totalorder %s1556_s30, %s1264_s25 }
  0x5d   : > { %p1261_p2 = pnand %p1259_p12, %p1245_p0  ;;  %p1267_p13 = scmp.lt.s32.totalorder %s1265_s2, %s1258_s20 }
  0x5f   : > { %p1262_p5 = pneg %p1261_p2  ;;  %p1268_p6 = por %p1267_p13, %p1266_p4 }
  0x61   : > { %p1269_p10 = pnand %p1268_p6, %p1262_p5 }
  0x63   : > { %1272 = shalt.err (!%p1269_p10)
}
  0x64   : > { %1126 = dma.hbm_to_vmem [thread:$0]  (!%p1558_p11), %s1553_s27, 32, %s1556_s30, %s189_s26  }
  0x65   : > { %s211_s10 = scalar_lea.vmem [#allocation5], %s1547_s28  ;;  %s208_s24 = scalar_lea.sflag [#allocation6], %s207_s8 }
  0x66   : > { %s219_s12 = sshll.u32 %s211_s10, 4  ;;  %s1273_s29 = scalar_lea.hbm %s1565_s7, 32  ;;  %s220_s12 = int_to_ptr.vmem [resolvable:$true] %s219_s12 }
  0x67   : > { %p1274_p4 = scmp.ne.s32.totalorder %s1565_s7, %s1273_s29  ;;  %s1278_s11 = scalar_lea.hbm %s1831_s1, 64 }
  0x68   : > { %p1279_p3 = scmp.lt.u32.totalorder %s1565_s7, %s1831_s1  ;;  %p1280_p7 = scmp.lt.u32.totalorder %s1278_s11, %s1273_s29 }
  0x69   : > { %p1276_p5 = pnand %p1274_p4, %p1245_p0  ;;  %p1282_p12 = scmp.lt.u32.totalorder %s1273_s29, %s1565_s7 }
  0x6a   : > { %p1281_p9 = por %p1280_p7, %p1279_p3 }
  0x6b   : > { %p1277_p1 = pneg %p1276_p5 }
  0x6c   : > { %p1283_p2 = por %p1282_p12, %p1281_p9 }
  0x6e   : > { %p1284_p13 = pnand %p1283_p2, %p1277_p1 }
  0x70   : > { %1287 = shalt.err (!%p1284_p13)
}
  0x71   : > { %s1288_s28 = scalar_lea.vmem %s220_s12, 32  ;;  %s1388_s27 = smov [#allocation5]  }
  0x72   : > { %p1289_p6 = scmp.ne.s32.totalorder %s220_s12, %s1288_s28  ;;  %s1293_s30 = sshll.u32 %s1388_s27, 4  ;;  %s1294_s30 = int_to_ptr.vmem [resolvable:$false] %s1293_s30 }
  0x73   : > { %s1295_s8 = scalar_lea.vmem %s1294_s30, 64  ;;  %p1296_p5 = scmp.lt.s32.totalorder %s220_s12, %s1294_s30 }
  0x74   : > { %p1291_p10 = pnand %p1289_p6, %p1245_p0  ;;  %p1297_p8 = scmp.lt.s32.totalorder %s1295_s8, %s1288_s28 }
  0x76   : > { %p1292_p4 = pneg %p1291_p10  ;;  %p1298_p3 = por %p1297_p8, %p1296_p5 }
  0x78   : > { %p1299_p7 = pnand %p1298_p3, %p1292_p4 }
  0x7a   : > { %1302 = shalt.err (!%p1299_p7)
}
  0x7b   : > { %1129 = dma.hbm_to_vmem [thread:$0]  (!%p1558_p11), %s1565_s7, 32, %s220_s12, %s208_s24  }
  0x7c   : > { %p1848_p1 = scmp.ne.s32.totalorder %s1842_s23, 0 }
  0x7d   : > { %s1618_s26 = sand.u32 (!%p1848_p1), 1, %s1373_s16   ;;  %p1849_p8 = scmp.ne.s32.totalorder (!%p1848_p1), %s1840_s21, 0 }
  0x7e   : > { %228 = sbr.rel (%p1848_p1) target bundleno = 477 (0x1dd), region = 36  ;;  %s1621_s10 = sshll.u32 (!%p1848_p1), %s1618_s26, 1 }
  0x7f   : > { %s231_s29 = scalar_lea.sflag (!%p1848_p1), [#allocation3], %s1618_s26  ;;  %s234_s6 = scalar_lea.vmem (!%p1848_p1), [#allocation2], %s1621_s10 }
  0x85   : > { %1348 = dma.done.wait (%p1849_p8), %s231_s29, 32  }
  0x86   : > { %1350 = vsyncadd (%p1849_p8), %s231_s29, 4294967264  ;;  %s239_s23 = sand.u32 1, %s1439_s19   ;;  %s243_s7 = scalar_lea.vmem [#allocation5], %s1621_s10 }
  0x87   : > { %s240_s5 = scalar_lea.sflag [#allocation6], %s239_s23 }
  0x88   : > { %1352 = dma.done.wait (%p1849_p8), %s240_s5, 32  }
  0x89   : > { %1354 = vsyncadd (%p1849_p8), %s240_s5, 4294967264  ;;  %p1850_p11 = scmp.eq.s32.totalorder %s1439_s19, 0 }
  0x8b   : > { %1356 = dma.done.wait (%p1850_p11), [#allocation6], 512   ;;  %p1851_p0 = pmov %p1850_p11 }
  0x8d   : > { %1358 = vsyncadd (%p1851_p0), [#allocation6], 4294966784  ;;  %p1852_p9 = pmov %p1851_p0 }
  0x8e   : > { %p1853_p12 = pmov %p1851_p0 }
  0x8f   : > { %1360 = dma.done.wait (%p1852_p9), [#allocation9], 512  }
  0x90   : > { %1362 = vsyncadd (%p1853_p12), [#allocation9], 4294966784  ;;  %v286_v0 = vlaneseq  ;;  %v1389_v1 = vmov 0.0   ;;  %v284_v6 = vld [vmem:[%s234_s6] sm:$0x3]  ;;  %v511_v27 = vld [vmem:[#allocation7] sm:$0xff] }
  0x91   : > { %579 = vmatprep.mubr.f32.mxu0 %v1389_v1  ;;  %672 = vmatprep.mubr.f32.mxu1 %v1389_v1  ;;  %v285_v7 = vld [vmem:[%s243_s7] sm:$0x3]  ;;  %v1390_v14 = vmov 1.0|1.0   ;;  %v604_v28 = vld [vmem:[#allocation8] sm:$0xff]  ;;  %v512_v29 = vld [vmem:[#allocation7 + $0x8] sm:$0xff] }
  0x92   : > { %v1646_v2 = vshrl.u32 %v286_v0, 7  ;;  %v605_v30 = vld [vmem:[#allocation8 + $0x8] sm:$0xff]  ;;  %v513_v31 = vld [vmem:[#allocation7 + $0x10] sm:$0xff]  ;;  %v514_v33 = vld [vmem:[#allocation7 + $0x18] sm:$0xff]  ;;  %s1037_s21 = sshll.u32 %s1439_s19, 5  ;;  %s280_s12 = scalar_lea.vmem [#allocation10], %s1621_s10 }
  0x93   : > { %v606_v32 = vld [vmem:[#allocation8 + $0x10] sm:$0xff]  ;;  %v607_v34 = vld [vmem:[#allocation8 + $0x18] sm:$0xff]  ;;  %s773_s24 = sshll.u32 %s280_s12, 4  ;;  %s1786_s25 = scalar_lea.hbm %s1834_s4, %s1037_s21  ;;  %s1788_s24 = int_to_ptr.vmem [resolvable:$true] %s773_s24 }
  0x94   : > { %v309_v3 = vsub.s32 1, %v1646_v2  ;;  %v305_v4 = vsub.s32 0, %v1646_v2  ;;  %v288_v5 = vadd.s32 8, %v1646_v2  ;;  %v289_v8 = vadd.s32 16, %v1646_v2  ;;  %s759_s2 = scalar_lea.sflag [#allocation4], %s1618_s26  ;;  %s1303_s28 = scalar_lea.vmem %s1788_s24, 32 }
  0x95   : > { %v290_v9 = vadd.s32 24, %v1646_v2  ;;  %v291_v15 = vadd.s32 32, %v1646_v2  ;;  %v292_v16 = vadd.s32 40, %v1646_v2  ;;  %v293_v17 = vadd.s32 48, %v1646_v2  ;;  %p1304_p2 = scmp.ne.s32.totalorder %s1788_s24, %s1303_s28  ;;  %p1854_p13 = scmp.ne.s32.totalorder %s1846_s13, 0 }
  0x96   : > { %v1653_v10 = vrot.slane %v284_v6, %v309_v3  ;;  %v1655_v11 = vrot.slane %v285_v7, %v309_v3  ;;  %v1657_v12 = vrot.slane %v284_v6, %v305_v4  ;;  %v1659_v13 = vrot.slane %v285_v7, %v305_v4  ;;  %s1392_s19 = smov [#allocation10]  }
  0x97   : > { %v294_v18 = vadd.s32 56, %v1646_v2  ;;  %v295_v19 = vadd.s32 64, %v1646_v2  ;;  %v296_v20 = vadd.s32 72, %v1646_v2  ;;  %v297_v21 = vadd.s32 80, %v1646_v2  ;;  %p1305_p6 = pnand %p1304_p2, %p1854_p13  ;;  %s1307_s27 = sshll.u32 %s1392_s19, 4  ;;  %s1308_s27 = int_to_ptr.vmem [resolvable:$false] %s1307_s27 }
  0x98   : > { %vm312_vm0 = vcmp.eq.s32.totalorder %v1646_v2, %v1653_v10  ;;  %vm314_vm1 = vcmp.eq.s32.totalorder %v288_v5, %v1653_v10  ;;  %vm416_vm2 = vcmp.eq.s32.totalorder %v1646_v2, %v1655_v11  ;;  %vm418_vm3 = vcmp.eq.s32.totalorder %v288_v5, %v1655_v11  ;;  %s1309_s30 = scalar_lea.vmem %s1308_s27, 64  ;;  %p1310_p4 = scmp.lt.s32.totalorder %s1788_s24, %s1308_s27 }
  0x99   : > { %vm1038_vm4 = vmpackc.low %vm314_vm1, %vm312_vm0  ;;  %vm311_vm5 = vcmp.eq.s32.totalorder %v1646_v2, %v1657_v12  ;;  %vm313_vm6 = vcmp.eq.s32.totalorder %v288_v5, %v1657_v12  ;;  %vm415_vm7 = vcmp.eq.s32.totalorder %v1646_v2, %v1659_v13  ;;  %vm417_vm8 = vcmp.eq.s32.totalorder %v288_v5, %v1659_v13  ;;  %p1306_p10 = pneg %p1305_p6  ;;  %p1311_p5 = scmp.lt.s32.totalorder %s1309_s30, %s1303_s28 }
  0x9a   : > { %1039 = vmatprep.subr.msk.bf16.mxu0 %vm1038_vm4, %v1390_v14  ;;  %vm1070_vm9 = vmpackc.low %vm418_vm3, %vm416_vm2  ;;  %vm316_vm10 = vcmp.eq.s32.totalorder %v289_v8, %v1653_v10  ;;  %vm318_vm11 = vcmp.eq.s32.totalorder %v290_v9, %v1653_v10  ;;  %vm420_vm13 = vcmp.eq.s32.totalorder %v289_v8, %v1655_v11  ;;  %vm422_vm14 = vcmp.eq.s32.totalorder %v290_v9, %v1655_v11 }
  0x9b   : > { %1071 = vmatprep.subr.msk.bf16.mxu1 %vm1070_vm9, %v1390_v14  ;;  %vm1040_vm12 = vmpackc.low %vm313_vm6, %vm311_vm5  ;;  %vm315_vm0 = vcmp.eq.s32.totalorder %v289_v8, %v1657_v12  ;;  %vm317_vm1 = vcmp.eq.s32.totalorder %v290_v9, %v1657_v12  ;;  %vm419_vm3 = vcmp.eq.s32.totalorder %v289_v8, %v1659_v13  ;;  %vm421_vm4 = vcmp.eq.s32.totalorder %v290_v9, %v1659_v13  ;;  %p1312_p3 = por %p1311_p5, %p1310_p4 }
  0x9c   : > { %1041 = vmatpush1.bf16.msk.msra.mxu0 %vm1040_vm12, %v1390_v14  ;;  %vm1072_vm15 = vmpackc.low %vm417_vm8, %vm415_vm7  ;;  %vm320_vm6 = vcmp.eq.s32.totalorder %v291_v15, %v1653_v10  ;;  %vm322_vm9 = vcmp.eq.s32.totalorder %v292_v16, %v1653_v10  ;;  %vm424_vm8 = vcmp.eq.s32.totalorder %v291_v15, %v1655_v11  ;;  %vm319_vm12 = vcmp.eq.s32.totalorder %v291_v15, %v1657_v12 }
  0x9d   : > { %1073 = vmatpush1.bf16.msk.msra.mxu1 %vm1072_vm15, %v1390_v14  ;;  %vm1042_vm2 = vmpackc.low %vm318_vm11, %vm316_vm10  ;;  %vm426_vm10 = vcmp.eq.s32.totalorder %v292_v16, %v1655_v11  ;;  %vm423_vm15 = vcmp.eq.s32.totalorder %v291_v15, %v1659_v13  ;;  %v298_v22 = vadd.s32 88, %v1646_v2  ;;  %v299_v23 = vadd.s32 96, %v1646_v2  ;;  %p1313_p7 = pnand %p1312_p3, %p1306_p10 }
  0x9e   : > { %1043 = vmatprep.subr.msk.bf16.mxu0 %vm1042_vm2, %v1390_v14  ;;  %vm1074_vm5 = vmpackc.low %vm422_vm14, %vm420_vm13  ;;  %vm321_vm13 = vcmp.eq.s32.totalorder %v292_v16, %v1657_v12  ;;  %vm425_vm2 = vcmp.eq.s32.totalorder %v292_v16, %v1659_v13  ;;  %v300_v24 = vadd.s32 104, %v1646_v2  ;;  %v301_v25 = vadd.s32 112, %v1646_v2 }
  0x9f   : > { %1075 = vmatprep.subr.msk.bf16.mxu1 %vm1074_vm5, %v1390_v14  ;;  %vm1044_vm7 = vmpackc.low %vm317_vm1, %vm315_vm0  ;;  %vm324_vm1 = vcmp.eq.s32.totalorder %v293_v17, %v1653_v10  ;;  %vm326_vm5 = vcmp.eq.s32.totalorder %v294_v18, %v1653_v10  ;;  %v302_v26 = vadd.s32 120, %v1646_v2 }
  0xa0   : > { %1045 = vmatpush1.bf16.msk.msra.mxu0 %vm1044_vm7, %v1390_v14  ;;  %vm1076_vm11 = vmpackc.low %vm421_vm4, %vm419_vm3  ;;  %vm428_vm4 = vcmp.eq.s32.totalorder %v293_v17, %v1655_v11  ;;  %vm323_vm7 = vcmp.eq.s32.totalorder %v293_v17, %v1657_v12 }
  0xa1   : > { %1077 = vmatpush1.bf16.msk.msra.mxu1 %vm1076_vm11, %v1390_v14  ;;  %vm1046_vm14 = vmpackc.low %vm322_vm9, %vm320_vm6  ;;  %vm430_vm6 = vcmp.eq.s32.totalorder %v294_v18, %v1655_v11  ;;  %vm427_vm11 = vcmp.eq.s32.totalorder %v293_v17, %v1659_v13 }
  0xa2   : > { %1047 = vmatprep.subr.msk.bf16.mxu0 %vm1046_vm14, %v1390_v14  ;;  %vm1078_vm0 = vmpackc.low %vm426_vm10, %vm424_vm8  ;;  %vm325_vm8 = vcmp.eq.s32.totalorder %v294_v18, %v1657_v12  ;;  %vm429_vm14 = vcmp.eq.s32.totalorder %v294_v18, %v1659_v13 }
  0xa3   : > { %1079 = vmatprep.subr.msk.bf16.mxu1 %vm1078_vm0, %v1390_v14  ;;  %vm1048_vm3 = vmpackc.low %vm321_vm13, %vm319_vm12  ;;  %vm328_vm13 = vcmp.eq.s32.totalorder %v295_v19, %v1653_v10  ;;  %vm330_vm0 = vcmp.eq.s32.totalorder %v296_v20, %v1653_v10 }
  0xa4   : > { %1049 = vmatpush1.bf16.msk.msra.mxu0 %vm1048_vm3, %v1390_v14  ;;  %vm1080_vm9 = vmpackc.low %vm425_vm2, %vm423_vm15  ;;  %vm432_vm2 = vcmp.eq.s32.totalorder %v295_v19, %v1655_v11  ;;  %vm327_vm3 = vcmp.eq.s32.totalorder %v295_v19, %v1657_v12 }
  0xa5   : > { %1081 = vmatpush1.bf16.msk.msra.mxu1 %vm1080_vm9, %v1390_v14  ;;  %vm1050_vm10 = vmpackc.low %vm326_vm5, %vm324_vm1  ;;  %vm434_vm1 = vcmp.eq.s32.totalorder %v296_v20, %v1655_v11  ;;  %vm431_vm9 = vcmp.eq.s32.totalorder %v295_v19, %v1659_v13 }
  0xa6   : > { %1051 = vmatprep.subr.msk.bf16.mxu0 %vm1050_vm10, %v1390_v14  ;;  %vm1082_vm12 = vmpackc.low %vm430_vm6, %vm428_vm4  ;;  %vm329_vm4 = vcmp.eq.s32.totalorder %v296_v20, %v1657_v12  ;;  %vm433_vm10 = vcmp.eq.s32.totalorder %v296_v20, %v1659_v13 }
  0xa7   : > { %1083 = vmatprep.subr.msk.bf16.mxu1 %vm1082_vm12, %v1390_v14  ;;  %vm1052_vm15 = vmpackc.low %vm325_vm8, %vm323_vm7  ;;  %vm332_vm8 = vcmp.eq.s32.totalorder %v297_v21, %v1653_v10  ;;  %vm334_vm12 = vcmp.eq.s32.totalorder %v298_v22, %v1653_v10 }
  0xa8   : > { %1053 = vmatpush1.bf16.msk.msra.mxu0 %vm1052_vm15, %v1390_v14  ;;  %vm1084_vm5 = vmpackc.low %vm429_vm14, %vm427_vm11  ;;  %vm436_vm14 = vcmp.eq.s32.totalorder %v297_v21, %v1655_v11  ;;  %vm331_vm15 = vcmp.eq.s32.totalorder %v297_v21, %v1657_v12 }
  0xa9   : > { %1085 = vmatpush1.bf16.msk.msra.mxu1 %vm1084_vm5, %v1390_v14  ;;  %vm1054_vm6 = vmpackc.low %vm330_vm0, %vm328_vm13  ;;  %vm438_vm13 = vcmp.eq.s32.totalorder %v298_v22, %v1655_v11  ;;  %vm435_vm5 = vcmp.eq.s32.totalorder %v297_v21, %v1659_v13 }
  0xaa   : > { %1055 = vmatprep.subr.msk.bf16.mxu0 %vm1054_vm6, %v1390_v14  ;;  %vm1086_vm7 = vmpackc.low %vm434_vm1, %vm432_vm2  ;;  %vm333_vm2 = vcmp.eq.s32.totalorder %v298_v22, %v1657_v12  ;;  %vm437_vm6 = vcmp.eq.s32.totalorder %v298_v22, %v1659_v13 }
  0xab   : > { %1087 = vmatprep.subr.msk.bf16.mxu1 %vm1086_vm7, %v1390_v14  ;;  %vm1056_vm11 = vmpackc.low %vm329_vm4, %vm327_vm3  ;;  %vm336_vm4 = vcmp.eq.s32.totalorder %v299_v23, %v1653_v10  ;;  %vm338_vm7 = vcmp.eq.s32.totalorder %v300_v24, %v1653_v10 }
  0xac   : > { %1057 = vmatpush1.bf16.msk.msra.mxu0 %vm1056_vm11, %v1390_v14  ;;  %vm1088_vm0 = vmpackc.low %vm433_vm10, %vm431_vm9  ;;  %vm440_vm10 = vcmp.eq.s32.totalorder %v299_v23, %v1655_v11  ;;  %vm335_vm11 = vcmp.eq.s32.totalorder %v299_v23, %v1657_v12 }
  0xad   : > { %1089 = vmatpush1.bf16.msk.msra.mxu1 %vm1088_vm0, %v1390_v14  ;;  %vm1058_vm1 = vmpackc.low %vm334_vm12, %vm332_vm8  ;;  %vm442_vm8 = vcmp.eq.s32.totalorder %v300_v24, %v1655_v11  ;;  %vm439_vm0 = vcmp.eq.s32.totalorder %v299_v23, %v1659_v13  ;;  %v1391_v23 = vmov 1966171168  }
  0xae   : > { %1059 = vmatprep.subr.msk.bf16.mxu0 %vm1058_vm1, %v1390_v14  ;;  %vm1090_vm3 = vmpackc.low %vm438_vm13, %vm436_vm14  ;;  %vm337_vm14 = vcmp.eq.s32.totalorder %v300_v24, %v1657_v12  ;;  %vm441_vm1 = vcmp.eq.s32.totalorder %v300_v24, %v1659_v13  ;;  %v739_v24 = vunpack.c.l.s4 %v1391_v23 }
  0xaf   : > { %1091 = vmatprep.subr.msk.bf16.mxu1 %vm1090_vm3, %v1390_v14  ;;  %vm1060_vm9 = vmpackc.low %vm333_vm2, %vm331_vm15  ;;  %vm340_vm2 = vcmp.eq.s32.totalorder %v301_v25, %v1653_v10  ;;  %vm342_vm3 = vcmp.eq.s32.totalorder %v302_v26, %v1653_v10 }
  0xb0   : > { %1061 = vmatpush1.bf16.msk.msra.mxu0 %vm1060_vm9, %v1390_v14  ;;  %vm1092_vm12 = vmpackc.low %vm437_vm6, %vm435_vm5  ;;  %vm444_vm6 = vcmp.eq.s32.totalorder %v301_v25, %v1655_v11  ;;  %vm446_vm9 = vcmp.eq.s32.totalorder %v302_v26, %v1655_v11 }
  0xb1   : > { %1093 = vmatpush1.bf16.msk.msra.mxu1 %vm1092_vm12, %v1390_v14  ;;  %vm1062_vm13 = vmpackc.low %vm338_vm7, %vm336_vm4  ;;  %vm339_vm7 = vcmp.eq.s32.totalorder %v301_v25, %v1657_v12  ;;  %vm341_vm12 = vcmp.eq.s32.totalorder %v302_v26, %v1657_v12 }
  0xb2   : > { %1063 = vmatprep.subr.msk.bf16.mxu0 %vm1062_vm13, %v1390_v14  ;;  %vm1094_vm15 = vmpackc.low %vm442_vm8, %vm440_vm10  ;;  %vm443_vm8 = vcmp.eq.s32.totalorder %v301_v25, %v1659_v13  ;;  %vm445_vm13 = vcmp.eq.s32.totalorder %v302_v26, %v1659_v13  ;;  %v740_v25 = vunpack.c.0.s8 %v739_v24 }
  0xb3   : > { %1095 = vmatprep.subr.msk.bf16.mxu1 %vm1094_vm15, %v1390_v14  ;;  %vm1064_vm5 = vmpackc.low %vm337_vm14, %vm335_vm11 }
  0xb4   : > { %1065 = vmatpush1.bf16.msk.msra.mxu0 %vm1064_vm5, %v1390_v14  ;;  %vm1096_vm4 = vmpackc.low %vm441_vm1, %vm439_vm0  ;;  %vm755_vm1 = vcmp.lt.s32.totalorder %v286_v0, 256 }
  0xb5   : > { %1097 = vmatpush1.bf16.msk.msra.mxu1 %vm1096_vm4, %v1390_v14  ;;  %vm1066_vm10 = vmpackc.low %vm342_vm3, %vm340_vm2 }
  0xb6   : > { %1067 = vmatprep.subr.msk.bf16.mxu0 %vm1066_vm10, %v1390_v14  ;;  %vm1098_vm11 = vmpackc.low %vm446_vm9, %vm444_vm6 }
  0xb7   : > { %1099 = vmatprep.subr.msk.bf16.mxu1 %vm1098_vm11, %v1390_v14  ;;  %vm1068_vm14 = vmpackc.low %vm341_vm12, %vm339_vm7 }
  0xb8   : > { %1069 = vmatpush1.bf16.msk.msra.mxu0 %vm1068_vm14, %v1390_v14  ;;  %vm1100_vm0 = vmpackc.low %vm445_vm13, %vm443_vm8 }
  0xb9   : > { %1101 = vmatpush1.bf16.msk.msra.mxu1 %vm1100_vm0, %v1390_v14 }
  0xbb   : > { %580 = vmatmul.mubr.f32.vlgmr.msra.gmra.mrb[0].mxu0 %v511_v27  ;;  %v743_v27 = vsub.s32 %v740_v25, %v1646_v2 }
  0xbc   : > { %673 = vmatmul.mubr.f32.vlgmr.msra.gmra.mrb[0].mxu1 %v604_v28  ;;  %585 = vmatprep.mubr.f32.mxu0 %v1389_v1 }
  0xbd   : > { %678 = vmatprep.mubr.f32.mxu1 %v1389_v1 }
  0xbf   : > { %586 = vmatmul.mubr.f32.gmra.mrb[2].mxu0 %v512_v29 }
  0xc0   : > { %679 = vmatmul.mubr.f32.gmra.mrb[2].mxu1 %v605_v30  ;;  %591 = vmatprep.mubr.f32.mxu0 %v1389_v1 }
  0xc1   : > { %684 = vmatprep.mubr.f32.mxu1 %v1389_v1 }
  0xc3   : > { %592 = vmatmul.mubr.f32.gmra.mrb[4].mxu0 %v513_v31 }
  0xc4   : > { %685 = vmatmul.mubr.f32.gmra.mrb[4].mxu1 %v606_v32  ;;  %597 = vmatprep.mubr.f32.mxu0 %v1389_v1 }
  0xc5   : > { %690 = vmatprep.mubr.f32.mxu1 %v1389_v1 }
  0xc7   : > { %598 = vmatmul.mubr.f32.gmra.mrb[6].mxu0 %v514_v33 }
  0xc8   : > { %691 = vmatmul.mubr.f32.gmra.mrb[6].mxu1 %v607_v34 }
 0x18e   : > { %v581_v35 = vpop.f32.mrb[0].mxu0 }
 0x18f   : > { %v674_v36 = vpop.f32.mrb[0].mxu1  ;;  %v583_v37 = vpop.f32.mrb[1].mxu0 }
 0x190   : > { %v697_v38 = vmul.f32 %v674_v36, %v581_v35  ;;  %v676_v39 = vpop.f32.mrb[1].mxu1 }
 0x191   : > { %v698_v40 = vmul.f32 %v676_v39, %v583_v37 }
 0x192   : > { %v587_v41 = vpop.f32.mrb[2].mxu0 }
 0x193   : > { %v680_v42 = vpop.f32.mrb[2].mxu1  ;;  %v589_v43 = vpop.f32.mrb[3].mxu0 }
 0x194   : > { %v699_v44 = vmul.f32 %v680_v42, %v587_v41  ;;  %v682_v45 = vpop.f32.mrb[3].mxu1 }
 0x195   : > { %v700_v46 = vmul.f32 %v682_v45, %v589_v43 }
 0x196   : > { %v705_v47 = vadd.f32 %v699_v44, %v697_v38  ;;  %v593_v48 = vpop.f32.mrb[4].mxu0 }
 0x197   : > { %v714_v49 = vadd.f32 %v700_v46, %v698_v40  ;;  %v686_v50 = vpop.f32.mrb[4].mxu1  ;;  %v595_v51 = vpop.f32.mrb[5].mxu0 }
 0x198   : > { %v701_v52 = vmul.f32 %v686_v50, %v593_v48  ;;  %v688_v53 = vpop.f32.mrb[5].mxu1 }
 0x199   : > { %v702_v54 = vmul.f32 %v688_v53, %v595_v51 }
 0x19a   : > { %v706_v55 = vadd.f32 %v705_v47, %v701_v52  ;;  %v599_v56 = vpop.f32.mrb[6].mxu0 }
 0x19b   : > { %v715_v57 = vadd.f32 %v714_v49, %v702_v54  ;;  %v692_v58 = vpop.f32.mrb[6].mxu1  ;;  %v601_v59 = vpop.f32.mrb[7].mxu0 }
 0x19c   : > { %v703_v60 = vmul.f32 %v692_v58, %v599_v56  ;;  %v694_v61 = vpop.f32.mrb[7].mxu1 }
 0x19d   : > { %v704_v62 = vmul.f32 %v694_v61, %v601_v59 }
 0x19e   : > { %v707_v63 = vadd.f32 %v706_v55, %v703_v60 }
 0x19f   : > { %v716_v1 = vadd.f32 %v715_v57, %v704_v62 }
 0x1a0   : > { %v708_v3 = vrot.slane %v707_v63, 4 }
 0x1a1   : > { %v717_v4 = vrot.slane %v716_v1, 4 }
 0x1a2   : > { %v709_v5 = vadd.f32 %v708_v3, %v707_v63 }
 0x1a3   : > { %v718_v6 = vadd.f32 %v717_v4, %v716_v1 }
 0x1a4   : > { %v710_v7 = vrot.slane %v709_v5, 2 }
 0x1a5   : > { %v719_v8 = vrot.slane %v718_v6, 2 }
 0x1a6   : > { %v711_v9 = vadd.f32 %v710_v7, %v709_v5 }
 0x1a7   : > { %v720_v10 = vadd.f32 %v719_v8, %v718_v6 }
 0x1a8   : > { %v712_v11 = vrot.slane %v711_v9, 1 }
 0x1a9   : > { %v721_v12 = vrot.slane %v720_v10, 1 }
 0x1aa   : > { %v713_v13 = vadd.f32 %v712_v11, %v711_v9 }
 0x1ab   : > { %v722_v14 = vadd.f32 %v721_v12, %v720_v10 }
 0x1ac   : > { %v723_v15 = vsub.f32 0.0, %v713_v13 }
 0x1ad   : > { %v724_v16 = vsub.f32 0.0, %v722_v14 }
 0x1ae   : > { %v725_v17 = vmul.f32 1.442695, %v723_v15 }
 0x1af   : > { %v727_v18 = vmul.f32 1.442695, %v724_v16 }
 0x1b0   : > { %1179 = vpow2.f32 %v725_v17 }
 0x1b1   : > { %1181 = vpow2.f32 %v727_v18 }
 0x1ba   : > { %v1180_v19 = vpop.eup %1179 }
 0x1bb   : > { %v1182_v20 = vpop.eup %1181  ;;  %v729_v21 = vadd.f32 1.0, %v1180_v19 }
 0x1bc   : > { %v730_v22 = vadd.f32 1.0, %v1182_v20 }
 0x1bd   : > { %1183 = vrcp.f32 %v729_v21 }
 0x1be   : > { %1185 = vrcp.f32 %v730_v22 }
 0x1c7   : > { %v1184_v26 = vpop.eup %1183 }
 0x1c8   : > { %v1186_v28 = vpop.eup %1185 }
 0x1c9   : > { %v737_v29 = vcombine.low %v1184_v26, %v1186_v28 }
 0x1cb   : > { %v744_v30 = vrot.slane %v737_v29, %v743_v27 }
 0x1cd   : > { %v751_v31 = vrot.slane %v744_v30, %v743_v27 }
 0x1cf   : > { %757 = vst.msk [vmem:[%s280_s12] sm:$0x3] %vm755_vm1, %v751_v31 }
 0x1d0   : > { %1316 = shalt.err (!%p1313_p7)
}
 0x1d1   : > { %s1317_s8 = scalar_lea.hbm %s1786_s25, 32  ;;  %s1321_s29 = scalar_lea.hbm %s1834_s4, 64 }
 0x1d2   : > { %p1318_p1 = scmp.ne.s32.totalorder %s1786_s25, %s1317_s8  ;;  %p1322_p0 = scmp.lt.u32.totalorder %s1786_s25, %s1834_s4 }
 0x1d3   : > { %p1323_p9 = scmp.lt.u32.totalorder %s1321_s29, %s1317_s8  ;;  %p1325_p2 = scmp.lt.u32.totalorder %s1317_s8, %s1786_s25 }
 0x1d4   : > { %p1319_p8 = pnand %p1318_p1, %p1854_p13 }
 0x1d5   : > { %p1324_p12 = por %p1323_p9, %p1322_p0 }
 0x1d6   : > { %p1320_p11 = pneg %p1319_p8 }
 0x1d7   : > { %p1326_p6 = por %p1325_p2, %p1324_p12 }
 0x1d9   : > { %p1327_p10 = pnand %p1326_p6, %p1320_p11 }
 0x1db   : > { %1330 = shalt.err (!%p1327_p10)
}
 0x1dc   : > { %1114 = dma.vmem_to_hbm [thread:$0]  (%p1854_p13), %s1788_s24, 32, %s1786_s25, %s759_s2  }
 0x1dd PF: > { %s785_s5 = sand.u32 1, %s1369_s15   ;;  %p1855_p4 = scmp.ne.s32.totalorder %s1841_s22, 0 }
 0x1de   : > { %p1856_p5 = scmp.ge.s32.totalorder %s1381_s18, 2  ;;  %s786_s7 = scalar_lea.sflag [#allocation4], %s785_s5 }
 0x1e0   : > { %p1131_p3 = pnand %p1856_p5, %p1855_p4 }
 0x1e2   : > { %1364 = dma.done.wait (!%p1131_p3), %s786_s7, 32  }
 0x1e3   : > { %1366 = vsyncadd (!%p1131_p3), %s786_s7, 4294967264  ;;  %p21_p7 = scmp.ge.s32.totalorder %s1528_s9, 4   ;;  %s1857_s15 = smov %s1373_s16 }
 0x1e4   : > { %s1858_s16 = smov %s1377_s17  ;;  %s1859_s17 = smov %s1544_s14 }
 0x1e5   : > { %s1860_s18 = smov %s1528_s9  ;;  %23 = sbr.rel (!%p21_p7) target bundleno = 10 (0xa), region = 102 }
 0x1ec   :  { %791 = vsyncpa [#allocation3], 1 }
 0x1ed   :  { %793 = vsyncpa [#allocation3 + $0x1], 1 }
 0x1ee   :  { %794 = vsyncpa [#allocation6], 1 }
 0x1ef   :  { %796 = vsyncpa [#allocation6 + $0x1], 1 }
 0x1f0   :  { %797 = vsyncpa [#allocation9], 1 }
 0x1f1   :  { %798 = vsyncpa [#allocation4], 1 }
 0x1f2   :  { %800 = vsyncpa [#allocation4 + $0x1], 1 }

</bundles_post_ra>
